<compile_context>
chip_gen: v5e
topology: v5e:2x2
jax: 0.10.0
libtpu: 0.0.40
codegen_flags: <defaults>
</compile_context>

<pallas_src>
import math

import jax
import jax.numpy as jnp
from jax.experimental import pallas as pl
from jax.experimental.pallas import tpu as pltpu

_LANE = 128
_DEFAULT_BLOCK_ROWS = 8192  # 8192 * 128 * 4B = 4 MiB per output block


def _cdiv(a: int, b: int) -> int:
    return -(-a // b)


def _fill_rows_kernel(pattern_ref, out_ref):
    """Fill the (TB, 128) output tile with the row-periodic pattern.

    pattern_ref : (unit, 128) VMEM — one period of output rows (resident; its
                  index_map is constant so it is DMA'd exactly once).
    out_ref     : (TB, 128) VMEM — current batch-row tile, TB % unit == 0
                  whenever TB > unit.

    Strategy: copy the pattern into the first `unit` rows, then double the
    filled region with VMEM-local copies (log2(TB/unit) statements).  All slice
    boundaries are static multiples of `unit` (itself a multiple of 8), so every
    store is a full, unmasked 128-lane vst and no large vector temporaries are
    materialized.  No scratch / no pl.when init -> correct under megacore
    sharding of the parallel grid axis.
    """
    unit = pattern_ref.shape[0]
    tb = out_ref.shape[0]
    first = min(unit, tb)
    out_ref[0:first, :] = pattern_ref[0:first, :]
    filled = first
    while filled < tb:  # static Python loop, ~log2(tb/unit) iterations
        n = min(filled, tb - filled)
        out_ref[filled:filled + n, :] = out_ref[0:n, :]
        filled += n


def _pattern_and_unit(flat_logits: jax.Array, f: int):
    """Build the (unit, 128) row pattern of the f-periodic flat value stream.

    In the flat (rows, 128) output layout, row contents repeat with period
    P = f // gcd(f, 128).  unit = lcm(P, 8) rounds that up to a sublane
    multiple so all in-kernel copies are (8,128)-tile aligned.
    """
    p = f // math.gcd(f, _LANE)            # row period of the pattern
    unit = (p * 8) // math.gcd(p, 8)       # lcm(p, 8)
    reps = (unit * _LANE) // f             # exact: unit*128 is a multiple of f
    pattern = jnp.tile(flat_logits, (reps,)).reshape(unit, _LANE)
    return pattern, unit


def _pick_block_rows(n_rows: int, unit: int, block_rows: int) -> int:
    """Choose the per-step output tile height (multiple of `unit`, or n_rows)."""
    if n_rows <= unit:
        return n_rows                      # single block == full array (allowed)
    tb = max(unit, (block_rows // unit) * unit)
    # Guarantee >= 2 grid steps so the "parallel" axis can shard across the two
    # v7x TensorCores (free aggregate store/DMA issue bandwidth there).
    if n_rows >= 2 * unit:
        tb = min(tb, max(unit, ((n_rows // 2) // unit) * unit))
    else:
        tb = min(tb, unit)
    return tb


def _run_broadcast(pattern: jax.Array, n_rows: int, tb: int) -> jax.Array:
    """Writes an (n_rows, 128) slab whose rows cycle through `pattern`'s rows."""
    unit, lane = pattern.shape
    grid = (_cdiv(n_rows, tb),)
    itemsize = pattern.dtype.itemsize
    return pl.pallas_call(
        _fill_rows_kernel,
        out_shape=jax.ShapeDtypeStruct((n_rows, lane), pattern.dtype),
        grid_spec=pltpu.PrefetchScalarGridSpec(
            num_scalar_prefetch=0,
            grid=grid,
            in_specs=[
                # Same small (unit, 128) pattern tile reused at every grid step.
                pl.BlockSpec((unit, lane), lambda b: (0, 0)),
            ],
            out_specs=pl.BlockSpec((tb, lane), lambda b: (b, 0)),
        ),
        compiler_params=pltpu.CompilerParams(
            dimension_semantics=("parallel",),
        ),
        cost_estimate=pl.CostEstimate(
            flops=0,
            transcendentals=0,
            bytes_accessed=(n_rows * lane + unit * lane) * itemsize,
        ),
    )(pattern)


def average_selector_forward(
    module_logits: jax.Array,
    task_ids: jax.Array,
    *,
    block_rows: int = _DEFAULT_BLOCK_ROWS,
) -> jax.Array:
    """Replicates AverageSelector.forward.

    module_logits : (n_splits, n_skills) float buffer
    task_ids      : (bs,) int — only its length matters (PyTorch only calls
                    .size(0) on it)
    returns       : (bs, n_splits, n_skills)
    """
    bs = task_ids.shape[0]
    n_splits, n_skills = module_logits.shape
    f = n_splits * n_skills

    # Degenerate shapes: nothing to write.
    if bs == 0 or f == 0:
        return jnp.zeros((bs, n_splits, n_skills), module_logits.dtype)

    flat = module_logits.reshape(-1)            # (f,)
    n_total = bs * f
    n_rows = _cdiv(n_total, _LANE)              # padded flat length = n_rows*128

    pattern, unit = _pattern_and_unit(flat, f)  # tiny one-time XLA op
    tb = _pick_block_rows(n_rows, unit, block_rows)

    out_rows = _run_broadcast(pattern, n_rows, tb)        # (n_rows, 128)
    # Free wrapper-side layout plumbing: drop the <=127-element tail pad and
    # restore the module's output shape.
    return out_rows.reshape(-1)[:n_total].reshape(bs, n_splits, n_skills)


if __name__ == "__main__":
    # Module config — matches AverageSelector(n_skills=8, n_splits=4).
    n_skills = 8
    n_splits = 4

    # Deterministic buffer init, exactly as in __init__:
    # torch.empty(n_splits, n_skills).fill_(1.0 / n_skills)
    module_logits = jnp.full((n_splits, n_skills), 1.0 / n_skills, dtype=jnp.float32)

    key = jax.random.PRNGKey(0)

    # Case 1: tiny batch (partial 128-lane row -> pad + slice path, grid=(1,)).
    bs1 = 2
    task_ids1 = jax.random.randint(key, (bs1,), 0, 10, dtype=jnp.int32)
    out1 = jax.block_until_ready(average_selector_forward(module_logits, task_ids1))
    ref1 = jnp.broadcast_to(module_logits[None, :, :], (bs1, n_splits, n_skills))
    assert out1.shape == (bs1, n_splits, n_skills)
    assert out1.dtype == jnp.float32
    assert jnp.array_equal(out1, ref1)

    # Case 2: batch big enough for >=2 grid steps (doubling fill + multi-block).
    bs2 = 1024
    task_ids2 = jax.random.randint(key, (bs2,), 0, 10, dtype=jnp.int32)
    out2 = jax.block_until_ready(average_selector_forward(module_logits, task_ids2))
    ref2 = jnp.broadcast_to(module_logits[None, :, :], (bs2, n_splits, n_skills))
    assert out2.shape == (bs2, n_splits, n_skills)
    assert jnp.array_equal(out2, ref2)

    # Case 3: ordering check with a non-uniform buffer (same kernel path).
    arb_logits = jax.random.normal(key, (n_splits, n_skills), dtype=jnp.float32)
    bs3 = 8
    task_ids3 = jax.random.randint(key, (bs3,), 0, 10, dtype=jnp.int32)
    out3 = jax.block_until_ready(average_selector_forward(arb_logits, task_ids3))
    ref3 = jnp.broadcast_to(arb_logits[None, :, :], (bs3, n_splits, n_skills))
    assert out3.shape == (bs3, n_splits, n_skills)
    assert jnp.array_equal(out3, ref3)

    print("KERNEL_OK")
</pallas_src>

<mosaic_0001>
module attributes {stable_mosaic.version = 11 : i64} {
  func.func @_fill_rows_kernel(%arg0: i32, %arg1: memref<8x128xf32, #tpu.memory_space<vmem>>, %arg2: memref<1x128xf32, #tpu.memory_space<vmem>>) attributes {dimension_semantics = [#tpu.dimension_semantics<parallel>], iteration_bounds = array<i64: 1>, scalar_prefetch = 0 : i64, scratch_operands = 0 : i64, tpu.core_type = #tpu.core_type<tc>, window_params = [{pipeline_mode = #tpu.pipeline_mode<synchronous>, transform_indices = @transform_0, window_bounds = array<i64: 8, 128>}, {transform_indices = @transform_1, window_bounds = array<i64: 1, 128>}]} {
    %c0 = arith.constant 0 : index
    %c0_0 = arith.constant 0 : index
    %0 = vector.load %arg1[%c0, %c0_0] : memref<8x128xf32, #tpu.memory_space<vmem>>, vector<1x128xf32>
    %c0_1 = arith.constant 0 : index
    %c0_2 = arith.constant 0 : index
    %1 = vector.load %arg2[%c0_1, %c0_2] : memref<1x128xf32, #tpu.memory_space<vmem>>, vector<1x128xf32>
    tpu.vector_store %arg2[%c0_1, %c0_2], %0 {strides = array<i32>} : memref<1x128xf32, #tpu.memory_space<vmem>>, vector<1x128xf32>,
    return
  }
  func.func @transform_0(%arg0: i32) -> (i32, i32) {
    %c0_i32 = arith.constant 0 : i32
    %c0_i32_0 = arith.constant 0 : i32
    %c0_i32_1 = arith.constant 0 : i32
    return %c0_i32, %c0_i32_0 : i32, i32
  }
  func.func @transform_1(%arg0: i32) -> (i32, i32) {
    %c0_i32 = arith.constant 0 : i32
    %c0_i32_0 = arith.constant 0 : i32
    return %arg0, %c0_i32 : i32, i32
  }
}

</mosaic_0001>

<bundles_post_ra>
// kernel: tpu_custom_call.1
= control target key start
LH: loop header
LB: loop body
LE: loop exit
PB: predicated region body
PF: predicated region fallthrough
CT: control target
= control target key end

     0   :  { %6 = vsyncpa [#allocation3], 0  ;;  %s114_s0 = inlined_call_operand.hbm [shape: f32[8,128], index: 0, kind: input, shape index: {}]   ;;  %s115_s1 = inlined_call_operand.hbm [shape: f32[1,128], index: 1, kind: output, shape index: {}]  }
   0x1   :  { %7 = vsyncpa [#allocation4], 0  ;;  %s13_s8 = sshll.u32 %s114_s0, 4  ;;  %s96_s9 = smov [#allocation2]   ;;  %s14_s8 = int_to_ptr.hbm [resolvable:$true] %s13_s8 }
   0x2   :  { %s15_s10 = sshll.u32 %s96_s9, 4  ;;  %s16_s10 = int_to_ptr.vmem [resolvable:$true] %s15_s10 }
   0x3   :  { %18 = dma.hbm_to_vmem [thread:$0]  %s14_s8, 128, %s16_s10, [#allocation3]  }
   0x4   :  { %92 = dma.done.wait [#allocation3], 128  }
   0x5   :  { %93 = vsyncadd [#allocation3], 4294967168  ;;  %s97_s11 = smov [#allocation5]   ;;  %s32_s15 = sshll.u32 %s115_s1, 4  ;;  %v23_v0 = vld [vmem:[#allocation2] sm:$0x1]  ;;  %s33_s15 = int_to_ptr.hbm [resolvable:$true] %s32_s15 }
   0x6   :  { %s30_s12 = sshll.u32 %s97_s11, 4  ;;  %24 = vst [vmem:[#allocation5] sm:$0x1] %v23_v0  ;;  %s31_s12 = int_to_ptr.vmem [resolvable:$true] %s30_s12 }
   0x7   :  { %35 = dma.vmem_to_hbm [thread:$0]  %s31_s12, 16, %s33_s15, [#allocation4]  }
   0x8   :  { %94 = dma.done.wait [#allocation4], 16  }
   0x9   :  { %95 = vsyncadd [#allocation4], 4294967280 }
   0xa   :  { %40 = vsyncpa [#allocation3], 1 }
   0xb   :  { %41 = vsyncpa [#allocation4], 1 }

</bundles_post_ra>
